<compile_context>
chip_gen: v6e
topology: v6e:2x2x1
jax: 0.10.0
libtpu: 0.0.40
codegen_flags: <defaults>
</compile_context>

<pallas_src>
import numpy as np
import jax
import jax.numpy as jnp
from jax.experimental import pallas as pl
from jax.experimental.pallas import tpu as pltpu


# ---------------------------------------------------------------------------
# Host-side parameter setup (== RPNAnchorGenerator.__init__ math, float64).
# ---------------------------------------------------------------------------
def _make_base_sizes(stride, base_size, ratios, scales):
    """Per-depth base boxes [x1, y1, x2, y2]; identical math to the module."""
    px, py = (base_size - 1) * 0.5, (base_size - 1) * 0.5
    base_sizes = []
    for r in ratios:
        for s in scales:
            size = base_size * base_size / r
            ws = np.round(np.sqrt(size))
            w = (ws * s - 1) * 0.5
            h = (np.round(ws * r) * s - 1) * 0.5
            base_sizes.append([px - w, py - h, px + w, py + h])
    return np.array(base_sizes, dtype=np.float64)  # (D, 4)


def _reference_anchors(stride, base_size, ratios, scales, alloc_size):
    """NumPy replica of RPNAnchorGenerator._generate_anchors (for checking)."""
    base_sizes = _make_base_sizes(stride, base_size, ratios, scales)
    height, width = alloc_size
    offset_x = np.arange(0, width * stride, stride)
    offset_y = np.arange(0, height * stride, stride)
    offset_x, offset_y = np.meshgrid(offset_x, offset_y)
    offsets = np.stack(
        (offset_x.ravel(), offset_y.ravel(), offset_x.ravel(), offset_y.ravel()),
        axis=1,
    )
    anchors = base_sizes.reshape((1, -1, 4)) + offsets.reshape((-1, 1, 4))
    return anchors.reshape((1, 1, height, width, -1)).astype(np.float32)


# ---------------------------------------------------------------------------
# Pallas kernel: one scalar-coefficient FMA per output block.
# ---------------------------------------------------------------------------
def _anchor_tile_kernel(tmpl_ref, ystep_ref, out_ref):
    # tmpl_ref  : (tile_h, WD4) f32, rows pre-offset for in-tile row index
    # ystep_ref : (tile_h, WD4) f32, per-lane y increment for one full tile step
    # out_ref   : (tile_h, WD4) f32
    # i stays exact in f32 for any realistic feature-map height (i < 2^24).
    i = pl.program_id(0).astype(jnp.float32)
    out_ref[...] = tmpl_ref[...] + i * ystep_ref[...]


def _generate_anchor_slab(base_sizes, stride, H, W, *, max_block_bytes=4 << 20):
    """Generate the (1, H*W*D, 4) anchor slab on device with one pallas_call."""
    D = int(base_sizes.shape[0])
    WD4 = W * D * 4
    row_bytes = WD4 * 4

    # Tile selection: biggest output block under the cap (default 4 MiB).
    # With output + both template inputs double-buffered (~6x block), the
    # internal cap of 5 MiB keeps total VMEM <= ~32 MiB -- inside the default
    # scoped limit on v6e/v7x and well under v7x's 64 MiB physical per-TC VMEM.
    cap = min(int(max_block_bytes), 5 << 20)
    tile_h = max(1, cap // row_bytes)
    if tile_h >= H:
        tile_h = H                              # single block, exact fit
    else:
        tile_h = max(8, (tile_h // 8) * 8)      # sublane-aligned
    num_tiles = pl.cdiv(H, tile_h)              # ragged last block is masked by Pallas
    block_bytes = tile_h * row_bytes

    # Host precompute in float64, rounded to f32 once (matches the reference
    # rounding for every row inside a tile).
    xmask = np.array([1.0, 0.0, 1.0, 0.0], dtype=np.float64)
    ymask = np.array([0.0, 1.0, 0.0, 1.0], dtype=np.float64)
    xs = (np.arange(W, dtype=np.float64) * stride)[None, :, None, None]       # (1,W,1,1)
    ys = (np.arange(tile_h, dtype=np.float64) * stride)[:, None, None, None]  # (th,1,1,1)
    tmpl = (base_sizes[None, None] + xs * xmask + ys * ymask)                 # (th,W,D,4)
    tmpl = np.ascontiguousarray(tmpl).reshape(tile_h, WD4).astype(np.float32)
    ystep = np.ascontiguousarray(
        np.broadcast_to(ymask * (float(stride) * tile_h), (tile_h, W, D, 4))
    ).reshape(tile_h, WD4).astype(np.float32)

    # Megacore: shard across TensorCores when there are >=2 sizeable tiles
    # (v7x has 2 TCs; on v5e/v6e this is a no-op).  Tiny / single-tile work
    # stays on one core to avoid pointless splitting.
    if (num_tiles >= 2 and block_bytes >= (1 << 20)) or num_tiles >= 4:
        semantics = ("parallel",)
    else:
        semantics = ("arbitrary",)

    # Explicit scoped-VMEM budget: 2x output + 2x each template input + slack.
    # >=32 MiB so v5e's 16 MiB default never constrains us; <=48 MiB so we
    # always leave headroom on v7x's 64 MiB physical per-TC VMEM.
    vmem_needed = 6 * block_bytes + (2 << 20)
    vmem_limit = int(min(max(vmem_needed, 32 << 20), 48 << 20))

    out = pl.pallas_call(
        _anchor_tile_kernel,
        out_shape=jax.ShapeDtypeStruct((H, WD4), jnp.float32),
        grid_spec=pltpu.PrefetchScalarGridSpec(
            num_scalar_prefetch=0,
            grid=(num_tiles,),
            in_specs=[
                pl.BlockSpec((tile_h, WD4), lambda i: (0, 0)),  # resident template
                pl.BlockSpec((tile_h, WD4), lambda i: (0, 0)),  # resident y-step
            ],
            out_specs=pl.BlockSpec((tile_h, WD4), lambda i: (i, 0)),
        ),
        compiler_params=pltpu.CompilerParams(
            dimension_semantics=semantics,
            vmem_limit_bytes=vmem_limit,
        ),
        cost_estimate=pl.CostEstimate(
            flops=2 * H * WD4,
            transcendentals=0,
            bytes_accessed=(H + 2 * tile_h) * row_bytes,
        ),
    )(jnp.asarray(tmpl), jnp.asarray(ystep))

    # Row-major (H, W*D4) == flattening order of (1, 1, H, W, D*4) -> (1, N, 4):
    # contiguous reshape, pure view, no relayout.
    return out.reshape(1, H * W * D, 4)


# ---------------------------------------------------------------------------
# Module wrapper with per-(H, W) caching (the single biggest perf lever:
# the anchor slab is a static function of the input spatial size, so repeated
# forwards reuse the device constant instead of re-launching the kernel).
# ---------------------------------------------------------------------------
class RPNAnchorGenerator:
    def __init__(self, stride, base_size, ratios, scales, alloc_size):
        if not base_size:
            raise ValueError("Invalid base_size: {}.".format(base_size))
        if not isinstance(ratios, (tuple, list)):
            ratios = [ratios]
        if not isinstance(scales, (tuple, list)):
            scales = [scales]
        self._stride = stride
        self._alloc_size = tuple(alloc_size)
        self._base_sizes = _make_base_sizes(stride, base_size, ratios, scales)
        self._num_depth = len(ratios) * len(scales)
        self._cache = {}

    @property
    def num_depth(self):
        return self._num_depth

    def __call__(self, x, *, max_block_bytes=4 << 20):
        """x: (1, C, H, W); returns (1, H*W*num_depth, 4) float32 anchors."""
        assert x.shape[0] == 1, "RPNAnchorGenerator expects (1, C, H, W) input"
        H, W = int(x.shape[2]), int(x.shape[3])
        assert H <= self._alloc_size[0] and W <= self._alloc_size[1], (
            "input spatial size exceeds alloc_size")
        key = (H, W, int(max_block_bytes))
        if key not in self._cache:
            self._cache[key] = _generate_anchor_slab(
                self._base_sizes, self._stride, H, W,
                max_block_bytes=max_block_bytes)
        return self._cache[key]


# ---------------------------------------------------------------------------
# Demo / correctness check.
# ---------------------------------------------------------------------------
if __name__ == "__main__":
    # Module hyper-parameters (deterministic; no checkpoint needed).
    stride = 16
    base_size = 16
    ratios = (0.5, 1.0, 2.0)
    scales = (2.0, 4.0, 8.0)
    alloc_size = (64, 64)  # pre-allocated anchor grid (>= any input H, W)

    gen = RPNAnchorGenerator(stride, base_size, ratios, scales, alloc_size)
    full = _reference_anchors(stride, base_size, ratios, scales, alloc_size)

    # Input tensor (NCHW, batch 1 as the module requires). Only shape matters.
    key = jax.random.PRNGKey(0)
    x = jax.random.normal(key, (1, 4, 16, 16), dtype=jnp.float32)

    out = jax.block_until_ready(gen(x))
    ref = full[:, :, : x.shape[2], : x.shape[3], :].reshape(1, -1, 4)
    assert out.shape == ref.shape, (out.shape, ref.shape)
    np.testing.assert_allclose(np.asarray(out), ref, rtol=1e-6, atol=0.0)

    # Second forward at the same spatial size hits the cache (no new launch).
    out_again = gen(x)
    assert out_again is out

    # Exercise the multi-tile + ragged-last-block path (tile_h=8, H=20 -> 3
    # tiles, last block masked by Pallas -- no padding / slicing in the wrapper).
    x2 = jax.random.normal(key, (1, 4, 20, 24), dtype=jnp.float32)
    out2 = jax.block_until_ready(gen(x2, max_block_bytes=32 << 10))
    ref2 = full[:, :, :20, :24, :].reshape(1, -1, 4)
    assert out2.shape == ref2.shape, (out2.shape, ref2.shape)
    np.testing.assert_allclose(np.asarray(out2), ref2, rtol=1e-6, atol=0.0)

    print("KERNEL_OK")
</pallas_src>

<mosaic_0001>
module attributes {stable_mosaic.version = 11 : i64} {
  func.func @_anchor_tile_kernel(%arg0: i32, %arg1: memref<16x576xf32, #tpu.memory_space<vmem>>, %arg2: memref<16x576xf32, #tpu.memory_space<vmem>>, %arg3: memref<16x576xf32, #tpu.memory_space<vmem>>) attributes {dimension_semantics = [#tpu.dimension_semantics<arbitrary>], iteration_bounds = array<i64: 1>, scalar_prefetch = 0 : i64, scratch_operands = 0 : i64, tpu.core_type = #tpu.core_type<tc>, window_params = [{pipeline_mode = #tpu.pipeline_mode<synchronous>, transform_indices = @transform_0, window_bounds = array<i64: 16, 576>}, {pipeline_mode = #tpu.pipeline_mode<synchronous>, transform_indices = @transform_1, window_bounds = array<i64: 16, 576>}, {transform_indices = @transform_2, window_bounds = array<i64: 16, 576>}]} {
    %0 = arith.sitofp %arg0 : i32 to f32
    %c0 = arith.constant 0 : index
    %c0_0 = arith.constant 0 : index
    %1 = vector.load %arg1[%c0, %c0_0] : memref<16x576xf32, #tpu.memory_space<vmem>>, vector<16x576xf32>
    %c0_1 = arith.constant 0 : index
    %c0_2 = arith.constant 0 : index
    %2 = vector.load %arg2[%c0_1, %c0_2] : memref<16x576xf32, #tpu.memory_space<vmem>>, vector<16x576xf32>
    %3 = vector.broadcast %0 : f32 to vector<16x576xf32>
    %4 = arith.mulf %3, %2 : vector<16x576xf32>
    %5 = arith.addf %1, %4 : vector<16x576xf32>
    %c0_3 = arith.constant 0 : index
    %c0_4 = arith.constant 0 : index
    %6 = vector.load %arg3[%c0_3, %c0_4] : memref<16x576xf32, #tpu.memory_space<vmem>>, vector<16x576xf32>
    tpu.vector_store %arg3[%c0_3, %c0_4], %5 {strides = array<i32>} : memref<16x576xf32, #tpu.memory_space<vmem>>, vector<16x576xf32>,
    return
  }
  func.func @transform_0(%arg0: i32) -> (i32, i32) {
    %c0_i32 = arith.constant 0 : i32
    %c0_i32_0 = arith.constant 0 : i32
    %c0_i32_1 = arith.constant 0 : i32
    return %c0_i32, %c0_i32_0 : i32, i32
  }
  func.func @transform_1(%arg0: i32) -> (i32, i32) {
    %c0_i32 = arith.constant 0 : i32
    %c0_i32_0 = arith.constant 0 : i32
    %c0_i32_1 = arith.constant 0 : i32
    return %c0_i32, %c0_i32_0 : i32, i32
  }
  func.func @transform_2(%arg0: i32) -> (i32, i32) {
    %c0_i32 = arith.constant 0 : i32
    %c0_i32_0 = arith.constant 0 : i32
    return %arg0, %c0_i32 : i32, i32
  }
}

</mosaic_0001>

<bundles_post_ra>
// kernel: tpu_custom_call.1
= control target key start
LH: loop header
LB: loop body
LE: loop exit
PB: predicated region body
PF: predicated region fallthrough
CT: control target
= control target key end

     0   :  { %7 = vsyncpa [#allocation3], 0  ;;  %s222_s0 = inlined_call_operand.hbm [shape: f32[16,576], index: 0, kind: input, shape index: {}]   ;;  %s223_s1 = inlined_call_operand.hbm [shape: f32[16,576], index: 1, kind: input, shape index: {}]   ;;  %s224_s2 = inlined_call_operand.hbm [shape: f32[16,576], index: 2, kind: output, shape index: {}]  }
   0x1   :  { %8 = vsyncpa [#allocation6], 0 }
   0x2   :  { %9 = vsyncpa [#allocation4], 0  ;;  %s182_s9 = smov [#allocation2]  }
   0x3   :  { %s15_s10 = sshll.u32 %s182_s9, 4  ;;  %s16_s10 = int_to_ptr.vmem [resolvable:$true] %s15_s10 }
   0x4   :  { %s124_s11 = scalar_lea.vmem %s16_s10, 1280  ;;  %p129_p1 = scmp.lt.s32.totalorder %s16_s10, %s16_s10 }
   0x5   :  { %p125_p0 = scmp.ne.s32.totalorder %s16_s10, %s124_s11  ;;  %p130_p2 = scmp.lt.s32.totalorder %s124_s11, %s124_s11 }
   0x7   :  { %p131_p3 = por %p130_p2, %p129_p1 }
   0x9   :  { %p132_p4 = pnand %p131_p3, %p125_p0 }
   0xb   :  { %135 = shalt.err (!%p132_p4)
}
   0xc   :  { %s183_s12 = smov 640   ;;  %s184_s13 = smov 40  }
   0xd   :  { %21 = dma.hbm_to_vmem [thread:$0]  %s222_s0, 1280, %s16_s10, [#allocation3], %s183_s12, %s183_s12, %s184_s13  }
   0xe   :  { %s185_s16 = smov [#allocation5]  }
   0xf   :  { %s27_s17 = sshll.u32 %s185_s16, 4  ;;  %s28_s17 = int_to_ptr.vmem [resolvable:$true] %s27_s17 }
  0x10   :  { %s144_s18 = scalar_lea.vmem %s28_s17, 1280  ;;  %p149_p6 = scmp.lt.s32.totalorder %s28_s17, %s28_s17 }
  0x11   :  { %p145_p5 = scmp.ne.s32.totalorder %s28_s17, %s144_s18  ;;  %p150_p7 = scmp.lt.s32.totalorder %s144_s18, %s144_s18 }
  0x13   :  { %p151_p8 = por %p150_p7, %p149_p6 }
  0x15   :  { %p152_p9 = pnand %p151_p8, %p145_p5 }
  0x17   :  { %155 = shalt.err (!%p152_p9)
}
  0x18   :  { %33 = dma.hbm_to_vmem [thread:$0]  %s223_s1, 1280, %s28_s17, [#allocation6], %s183_s12, %s183_s12, %s184_s13  }
  0x19   :  { %176 = dma.done.wait [#allocation3], 1280  }
  0x1a   :  { %177 = vsyncadd [#allocation3], 4294966016 }
  0x1b   :  { %178 = dma.done.wait [#allocation6], 1280  }
  0x1c   :  { %179 = vsyncadd [#allocation6], 4294966016  ;;  %v41_v0 = vld [vmem:[#allocation2] sm:$0xff]  ;;  %v51_v1 = vld [vmem:[#allocation5] sm:$0xff]  ;;  %vm86_vm0 = vcmask 523264   ;;  %s186_s0 = smov [#allocation7]  }
  0x1d   :  { %v42_v2 = vld [vmem:[#allocation2 + $0x8] sm:$0xff]  ;;  %v62_v3 = vmul.f32 0.0, %v51_v1  ;;  %v52_v4 = vld [vmem:[#allocation5 + $0x8] sm:$0xff]  ;;  %v43_v5 = vld [vmem:[#allocation2 + $0x10] sm:$0xff]  ;;  %s98_s1 = sshll.u32 %s186_s0, 4  ;;  %s99_s1 = int_to_ptr.vmem [resolvable:$true] %s98_s1 }
  0x1e   :  { %v53_v6 = vld [vmem:[#allocation5 + $0x10] sm:$0xff]  ;;  %v63_v7 = vmul.f32 0.0, %v52_v4  ;;  %v44_v9 = vld [vmem:[#allocation2 + $0x18] sm:$0xff]  ;;  %v54_v10 = vld [vmem:[#allocation5 + $0x18] sm:$0xff]  ;;  %s156_s21 = scalar_lea.vmem %s99_s1, 1280  ;;  %p161_p11 = scmp.lt.s32.totalorder %s99_s1, %s99_s1 }
  0x1f   :  { %v64_v8 = vmul.f32 0.0, %v53_v6  ;;  %v45_v11 = vld [vmem:[#allocation2 + $0x20] sm:$0xff]  ;;  %v72_v12 = vadd.f32 %v62_v3, %v41_v0  ;;  %v65_v13 = vmul.f32 0.0, %v54_v10  ;;  %v55_v14 = vld [vmem:[#allocation5 + $0x20] sm:$0xff]  ;;  %v46_v15 = vld [vmem:[#allocation2 + $0x28] sm:$0xff]  ;;  %p157_p10 = scmp.ne.s32.totalorder %s99_s1, %s156_s21  ;;  %p162_p12 = scmp.lt.s32.totalorder %s156_s21, %s156_s21 }
  0x20   :  { %v56_v16 = vld [vmem:[#allocation5 + $0x28] sm:$0xff]  ;;  %v73_v17 = vadd.f32 %v63_v7, %v42_v2  ;;  %v66_v19 = vmul.f32 0.0, %v55_v14  ;;  %v47_v21 = vld [vmem:[#allocation2 + $0x30] sm:$0xff]  ;;  %v57_v22 = vld [vmem:[#allocation5 + $0x30] sm:$0xff] }
  0x21   :  { %v74_v18 = vadd.f32 %v64_v8, %v43_v5  ;;  %v67_v20 = vmul.f32 0.0, %v56_v16  ;;  %v48_v23 = vld [vmem:[#allocation2 + $0x38] sm:$0xff]  ;;  %82 = vst [vmem:[#allocation7] sm:$0xff] %v72_v12  ;;  %v75_v24 = vadd.f32 %v65_v13, %v44_v9  ;;  %v68_v25 = vmul.f32 0.0, %v57_v22  ;;  %v58_v26 = vld [vmem:[#allocation5 + $0x38] sm:$0xff]  ;;  %v49_v27 = vld [vmem:[#allocation2 + $0x40] sm:$0xff]  ;;  %p163_p13 = por %p162_p12, %p161_p11 }
  0x22   :  { %v59_v28 = vld [vmem:[#allocation5 + $0x40] sm:$0xff]  ;;  %83 = vst [vmem:[#allocation7 + $0x8] sm:$0xff] %v73_v17  ;;  %v76_v29 = vadd.f32 %v66_v19, %v45_v11  ;;  %v69_v31 = vmul.f32 0.0, %v58_v26  ;;  %v50_v33 = vld [vmem:[#allocation2 + $0x48] sm:$0xff]  ;;  %v60_v34 = vld [vmem:[#allocation5 + $0x48] sm:$0xff] }
  0x23   :  { %84 = vst [vmem:[#allocation7 + $0x10] sm:$0xff] %v74_v18  ;;  %v77_v30 = vadd.f32 %v67_v20, %v46_v15  ;;  %v70_v32 = vmul.f32 0.0, %v59_v28  ;;  %85 = vst [vmem:[#allocation7 + $0x18] sm:$0xff] %v75_v24  ;;  %v78_v35 = vadd.f32 %v68_v25, %v47_v21  ;;  %v71_v36 = vmul.f32 0.0, %v60_v34  ;;  %p164_p0 = pnand %p163_p13, %p157_p10 }
  0x24   :  { %87 = vst.msk [vmem:[#allocation7 + $0x20] sm:$0xff] %vm86_vm0, %v76_v29  ;;  %v79_v37 = vadd.f32 %v69_v31, %v48_v23 }
  0x25   :  { %88 = vst [vmem:[#allocation7 + $0x28] sm:$0xff] %v77_v30  ;;  %v80_v38 = vadd.f32 %v70_v32, %v49_v27  ;;  %89 = vst [vmem:[#allocation7 + $0x30] sm:$0xff] %v78_v35  ;;  %v81_v39 = vadd.f32 %v71_v36, %v50_v33 }
  0x26   :  { %90 = vst [vmem:[#allocation7 + $0x38] sm:$0xff] %v79_v37 }
  0x27   :  { %91 = vst [vmem:[#allocation7 + $0x40] sm:$0xff] %v80_v38  ;;  %92 = vst.msk [vmem:[#allocation7 + $0x48] sm:$0xff] %vm86_vm0, %v81_v39 }
  0x28   :  { %167 = shalt.err (!%p164_p0)
}
  0x29   :  { %104 = dma.vmem_to_hbm [thread:$0]  %s99_s1, 1280, %s224_s2, [#allocation4], %s183_s12, %s183_s12, %s184_s13  }
  0x2a   :  { %180 = dma.done.wait [#allocation4], 1280  }
  0x2b   :  { %181 = vsyncadd [#allocation4], 4294966016 }
  0x2c   :  { %108 = vsyncpa [#allocation3], 1 }
  0x2d   :  { %109 = vsyncpa [#allocation6], 1 }
  0x2e   :  { %110 = vsyncpa [#allocation4], 1 }

</bundles_post_ra>
